<compile_context>
chip_gen: v5e
topology: v5e:2x2
jax: 0.10.0
libtpu: 0.0.40
codegen_flags: <defaults>
</compile_context>

<pallas_src>
import jax
import jax.numpy as jnp
from jax import lax
from jax.experimental import pallas as pl
from jax.experimental.pallas import tpu as pltpu


def _round_up(x, m):
    return (x + m - 1) // m * m


def _padded_vmem_bytes(shape, dtype):
    """Lane/sublane-padded VMEM footprint of a 2-D array."""
    n, k = int(shape[0]), int(shape[1])
    itemsize = jnp.dtype(dtype).itemsize
    sublane = 8 * max(1, 4 // itemsize)          # f32 -> 8, bf16 -> 16, int8 -> 32
    return _round_up(n, sublane) * _round_up(k, 128) * itemsize


def _make_ncf_kernel(tb: int, win: int, emit_emb: bool):
    """NCF forward for one batch tile of `tb` examples (win = DMA window)."""

    def kernel(*refs):
        # Scalar-prefetch refs (SMEM): user / item indices for the whole batch.
        uid_ref, iid_ref = refs[0], refs[1]
        # Inputs: tables (HBM or VMEM-resident), per-table linear weights, bias.
        w_ref, h_ref, wu_ref, wv_ref, lb_ref = refs[2:7]
        pos = 7
        out_ref = refs[pos]; pos += 1
        if emit_emb:
            u_out_ref, v_out_ref = refs[pos], refs[pos + 1]; pos += 2
        ubuf, vbuf = refs[pos], refs[pos + 1]; pos += 2
        sems = refs[pos]

        base = pl.program_id(0) * tb

        # ---- Gather: copy only the requested embedding rows into ubuf/vbuf. ----
        # Bounded window of `win` in-flight row copies per table so the latency
        # of the small row transfers overlaps, with a fixed (2, win) semaphore
        # array.  `w_ref` / `h_ref` are either raw HBM refs (large tables) or
        # VMEM-resident blocks (small tables) - the copy code is identical.
        def _wait(b):
            slot = b & (win - 1)
            pltpu.make_async_copy(w_ref.at[0], ubuf.at[b], sems.at[0, slot]).wait()
            pltpu.make_async_copy(h_ref.at[0], vbuf.at[b], sems.at[1, slot]).wait()

        @pl.loop(0, tb)
        def _(b):
            # Read the scalar indices BEFORE any wait: a DMA .wait() breaks
            # SMEM sst->sld forwarding on the scalar (address-forming) path.
            u_idx = uid_ref[base + b]
            i_idx = iid_ref[base + b]

            @pl.when(b >= win)
            def _():
                _wait(b - win)          # retire the copy that used this slot

            slot = b & (win - 1)
            pltpu.make_async_copy(w_ref.at[u_idx], ubuf.at[b], sems.at[0, slot]).start()
            pltpu.make_async_copy(h_ref.at[i_idx], vbuf.at[b], sems.at[1, slot]).start()

        @pl.loop(tb - win, tb)
        def _(b):                        # drain the last `win` rows
            _wait(b)

        u = ubuf[...]                    # (tb, K), table dtype
        v = vbuf[...]                    # (tb, K), table dtype
        if emit_emb:
            # Emit the gathered embeddings in the table dtype (no cast on the
            # HBM writeback path).
            u_out_ref[...] = u
            v_out_ref[...] = v

        # ---- Linear (2K -> 1) + sigmoid, lane-dense. ----
        # Contract K with dot_general: (1,K) . (tb,K)^T -> (1, tb).  This lands
        # directly lane-dense for the unmasked (1, 1, tb) store and avoids any
        # (tb, tb) transpose trick or sublane reduce.
        dn = (((1,), (1,)), ((), ()))
        logit_row = (
            lax.dot_general(wu_ref[...], u.astype(jnp.float32), dn,
                            preferred_element_type=jnp.float32)
            + lax.dot_general(wv_ref[...], v.astype(jnp.float32), dn,
                              preferred_element_type=jnp.float32)
            + lb_ref[0]
        )                                                  # (1, tb)
        out_ref[...] = jax.nn.sigmoid(logit_row)[None]     # (1, 1, tb)

    return kernel


def ncf_forward(x, W_emb, H_emb, linear_w, linear_b, is_training=False,
                *, block_b=None, tables_in_vmem=None):
    """NCF forward: sigmoid(linear(cat(W[x[:,0]], H[x[:,1]]))), squeezed.

    x: (B, 2) integer array (user index, item index).
    Returns pred (B,)  [and (U_emb, V_emb) when is_training=True].
    """
    B = int(x.shape[0])
    num_users, K = W_emb.shape
    num_items, K2 = H_emb.shape
    assert K2 == K
    assert linear_w.shape == (1, 2 * K)

    # Indices live on the scalar path; clamp because TPU DMAs have no OOB check.
    uid = jnp.clip(x[:, 0].astype(jnp.int32), 0, num_users - 1)
    iid = jnp.clip(x[:, 1].astype(jnp.int32), 0, num_items - 1)

    # Batch tile: one 8-aligned tile for small batches; 512 (lane-dense
    # multiple of 128, n_tiles >= 2 so v7x can split across both TCs) above.
    if block_b is None:
        tb = _round_up(max(B, 1), 8) if B <= 512 else 512
    else:
        tb = _round_up(block_b, 8)
    b_pad = _round_up(B, tb)
    n_tiles = b_pad // tb
    if b_pad != B:
        pad = b_pad - B
        uid = jnp.concatenate([uid, jnp.zeros((pad,), jnp.int32)])
        iid = jnp.concatenate([iid, jnp.zeros((pad,), jnp.int32)])
    # TODO(synk): for very large B (~>100K), deliver uid/iid as per-tile blocked
    # SMEM inputs instead of whole-array scalar prefetch to keep SMEM flat.

    # Table residency: pin both embedding tables in VMEM when their
    # double-buffered, lane-padded footprint fits comfortably on every chip
    # generation (v7x has only 64 MiB of VMEM).  The tables then stream in once
    # at full HBM bandwidth and the row gather becomes local VMEM copies.
    padded_tables = (_padded_vmem_bytes(W_emb.shape, W_emb.dtype)
                     + _padded_vmem_bytes(H_emb.shape, H_emb.dtype))
    if tables_in_vmem is None:
        tables_in_vmem = 2 * padded_tables <= 24 * 1024 * 1024
    resident = bool(tables_in_vmem)

    # Split the (1, 2K) linear weight into user / item halves host-side; bias
    # goes to SMEM.
    w_user = linear_w[:, :K].astype(jnp.float32)    # (1, K)
    w_item = linear_w[:, K:].astype(jnp.float32)    # (1, K)
    bias = jnp.reshape(linear_b, (1,)).astype(jnp.float32)

    emit_emb = bool(is_training)
    win = min(64, tb)                                # in-flight rows per table
    win = 1 << (win.bit_length() - 1)                # power of two (>= 8)

    kernel = _make_ncf_kernel(tb, win, emit_emb)

    if resident:
        table_specs = [
            pl.BlockSpec((num_users, K), lambda t, u, i: (0, 0)),   # W resident in VMEM
            pl.BlockSpec((num_items, K), lambda t, u, i: (0, 0)),   # H resident in VMEM
        ]
    else:
        table_specs = [
            pl.BlockSpec(memory_space=pl.ANY),                      # W stays in HBM
            pl.BlockSpec(memory_space=pl.ANY),                      # H stays in HBM
        ]

    in_specs = table_specs + [
        pl.BlockSpec((1, K), lambda t, u, i: (0, 0)),               # w_user
        pl.BlockSpec((1, K), lambda t, u, i: (0, 0)),               # w_item
        pl.BlockSpec(memory_space=pltpu.MemorySpace.SMEM),          # bias (scalar path)
    ]

    out_shapes = [jax.ShapeDtypeStruct((n_tiles, 1, tb), jnp.float32)]
    out_specs = [pl.BlockSpec((1, 1, tb), lambda t, u, i: (t, 0, 0))]
    if emit_emb:
        # Embedding outputs keep the table dtype (halves writeback for bf16 tables).
        out_shapes += [jax.ShapeDtypeStruct((b_pad, K), W_emb.dtype),
                       jax.ShapeDtypeStruct((b_pad, K), H_emb.dtype)]
        out_specs += [pl.BlockSpec((tb, K), lambda t, u, i: (t, 0))] * 2

    scratch_shapes = [
        pltpu.VMEM((tb, K), W_emb.dtype),            # gathered user rows
        pltpu.VMEM((tb, K), H_emb.dtype),            # gathered item rows
        pltpu.SemaphoreType.DMA((2, win)),           # bounded DMA window
    ]

    grid_spec = pltpu.PrefetchScalarGridSpec(
        num_scalar_prefetch=2,
        grid=(n_tiles,),
        in_specs=in_specs,
        out_specs=tuple(out_specs),
        scratch_shapes=scratch_shapes,
    )

    vmem_limit = 40 * 1024 * 1024 if resident else 32 * 1024 * 1024

    results = pl.pallas_call(
        kernel,
        grid_spec=grid_spec,
        out_shape=tuple(out_shapes),
        compiler_params=pltpu.CompilerParams(
            dimension_semantics=("parallel",),       # batch tiles split across TCs
            vmem_limit_bytes=vmem_limit,
        ),
    )(uid, iid, W_emb, H_emb, w_user, w_item, bias)

    pred = results[0].reshape(b_pad)[:B]
    if is_training:
        return pred, results[1][:B], results[2][:B]
    return pred


def _reference_forward(x, W_emb, H_emb, linear_w, linear_b):
    U = W_emb[x[:, 0]]
    V = H_emb[x[:, 1]]
    z = jnp.concatenate([U, V], axis=1)
    logits = z @ linear_w.T + linear_b
    return jnp.squeeze(jax.nn.sigmoid(logits)), U, V


if __name__ == "__main__":
    num_users, num_items, embedding_k = 32, 48, 4

    key = jax.random.PRNGKey(0)
    k_w, k_h, k_lw, k_lb, k_u, k_i = jax.random.split(key, 6)

    # Parameter init (shapes mirror the PyTorch module's __init__).
    W_emb = jax.random.normal(k_w, (num_users, embedding_k), dtype=jnp.float32)
    H_emb = jax.random.normal(k_h, (num_items, embedding_k), dtype=jnp.float32)
    bound = 1.0 / (2 * embedding_k) ** 0.5
    linear_w = jax.random.uniform(k_lw, (1, 2 * embedding_k),
                                  minval=-bound, maxval=bound, dtype=jnp.float32)
    linear_b = jax.random.uniform(k_lb, (1,),
                                  minval=-bound, maxval=bound, dtype=jnp.float32)

    def make_x(k1, k2, b):
        return jnp.stack(
            [jax.random.randint(k1, (b,), 0, num_users, dtype=jnp.int32),
             jax.random.randint(k2, (b,), 0, num_items, dtype=jnp.int32)], axis=1)

    # ---- Small batch (default: VMEM-resident tables). ----
    B = 8
    x = make_x(k_u, k_i, B)
    ref_pred, ref_U, ref_V = _reference_forward(x, W_emb, H_emb, linear_w, linear_b)

    pred = jax.block_until_ready(
        ncf_forward(x, W_emb, H_emb, linear_w, linear_b, is_training=False))
    assert pred.shape == (B,)
    assert jnp.allclose(pred, ref_pred, atol=1e-5, rtol=1e-5)

    pred_t, U_emb, V_emb = ncf_forward(x, W_emb, H_emb, linear_w, linear_b,
                                       is_training=True)
    jax.block_until_ready((pred_t, U_emb, V_emb))
    assert jnp.allclose(pred_t, ref_pred, atol=1e-5, rtol=1e-5)
    assert jnp.allclose(U_emb, ref_U, atol=1e-6, rtol=1e-6)
    assert jnp.allclose(V_emb, ref_V, atol=1e-6, rtol=1e-6)

    # Same batch through the HBM row-DMA gather path (large-table fallback).
    pred_hbm = jax.block_until_ready(
        ncf_forward(x, W_emb, H_emb, linear_w, linear_b, tables_in_vmem=False))
    assert jnp.allclose(pred_hbm, ref_pred, atol=1e-5, rtol=1e-5)

    # ---- Larger batch, not a multiple of the 512 tile (padding + 2 tiles). ----
    B2 = 700
    k_u2, k_i2 = jax.random.split(jax.random.PRNGKey(1), 2)
    x2 = make_x(k_u2, k_i2, B2)
    ref2, _, _ = _reference_forward(x2, W_emb, H_emb, linear_w, linear_b)

    pred2 = jax.block_until_ready(
        ncf_forward(x2, W_emb, H_emb, linear_w, linear_b))
    assert pred2.shape == (B2,)
    assert jnp.allclose(pred2, ref2, atol=1e-5, rtol=1e-5)

    pred2_hbm = jax.block_until_ready(
        ncf_forward(x2, W_emb, H_emb, linear_w, linear_b, tables_in_vmem=False))
    assert jnp.allclose(pred2_hbm, ref2, atol=1e-5, rtol=1e-5)

    print("KERNEL_OK")
</pallas_src>

<mosaic_0001>
module attributes {stable_mosaic.version = 11 : i64} {
  func.func @kernel(%arg0: i32, %arg1: memref<8xi32, #tpu.memory_space<smem>>, %arg2: memref<8xi32, #tpu.memory_space<smem>>, %arg3: memref<32x4xf32, #tpu.memory_space<vmem>>, %arg4: memref<48x4xf32, #tpu.memory_space<vmem>>, %arg5: memref<1x4xf32, #tpu.memory_space<vmem>>, %arg6: memref<1x4xf32, #tpu.memory_space<vmem>>, %arg7: memref<1xf32, #tpu.memory_space<smem>>, %arg8: memref<1x1x8xf32, #tpu.memory_space<vmem>>, %arg9: memref<8x4xf32, #tpu.memory_space<vmem>>, %arg10: memref<8x4xf32, #tpu.memory_space<vmem>>, %arg11: memref<2x8x!tpu.dma_semaphore, #tpu.memory_space<semaphore_mem>>) attributes {dimension_semantics = [#tpu.dimension_semantics<parallel>], iteration_bounds = array<i64: 1>, scalar_prefetch = 2 : i64, scratch_operands = 3 : i64, tpu.core_type = #tpu.core_type<tc>, window_params = [{pipeline_mode = #tpu.pipeline_mode<synchronous>, transform_indices = @transform_0, window_bounds = array<i64: 32, 4>}, {pipeline_mode = #tpu.pipeline_mode<synchronous>, transform_indices = @transform_1, window_bounds = array<i64: 48, 4>}, {pipeline_mode = #tpu.pipeline_mode<synchronous>, transform_indices = @transform_2, window_bounds = array<i64: 1, 4>}, {pipeline_mode = #tpu.pipeline_mode<synchronous>, transform_indices = @transform_3, window_bounds = array<i64: 1, 4>}, {transform_indices = @transform_4, window_bounds = array<i64: 1>}, {transform_indices = @transform_5, window_bounds = array<i64: 1, 1, 8>}]} {
    %c8_i32 = arith.constant 8 : i32
    %0 = arith.muli %arg0, %c8_i32 : i32
    %c0_i32 = arith.constant 0 : i32
    %c8_i32_0 = arith.constant 8 : i32
    %1 = arith.addi %c0_i32, %c8_i32_0 : i32
    %c1_i32 = arith.constant 1 : i32
    scf.for %arg12 = %c0_i32 to %1 step %c1_i32  : i32 {
      %c1_i32_19 = arith.constant 1 : i32
      %20 = arith.muli %arg12, %c1_i32_19 : i32
      %c0_i32_20 = arith.constant 0 : i32
      %21 = arith.addi %c0_i32_20, %20 : i32
      %22 = arith.addi %0, %21 : i32
      %23 = arith.index_cast %22 : i32 to index
      %24 = memref.load %arg1[%23] : memref<8xi32, #tpu.memory_space<smem>>
      %25 = arith.addi %0, %21 : i32
      %26 = arith.index_cast %25 : i32 to index
      %27 = memref.load %arg2[%26] : memref<8xi32, #tpu.memory_space<smem>>
      %c8_i32_21 = arith.constant 8 : i32
      %28 = arith.cmpi sge, %21, %c8_i32_21 : i32
      %29 = arith.extui %28 : i1 to i32
      %c0_i32_22 = arith.constant 0 : i32
      %30 = arith.cmpi ne, %29, %c0_i32_22 : i32
      scf.if %30 {
        %c8_i32_29 = arith.constant 8 : i32
        %44 = arith.subi %21, %c8_i32_29 : i32
        %c7_i32_30 = arith.constant 7 : i32
        %45 = arith.andi %44, %c7_i32_30 : i32
        %c0_i32_31 = arith.constant 0 : i32
        %c0_i32_32 = arith.constant 0 : i32
        %c0_i32_33 = arith.constant 0 : i32
        %46 = tpu.memref_slice %arg3[%c0_i32_31, %c0_i32_33] : memref<32x4xf32, #tpu.memory_space<vmem>> -> memref<1x4xf32, #tpu.memory_space<vmem>>
        %47 = tpu.memref_squeeze %46 : memref<1x4xf32, #tpu.memory_space<vmem>> -> memref<4xf32, #tpu.memory_space<vmem>>
        %c0_i32_34 = arith.constant 0 : i32
        %48 = tpu.memref_slice %arg9[%44, %c0_i32_34] : memref<8x4xf32, #tpu.memory_space<vmem>> -> memref<1x4xf32, #tpu.memory_space<vmem>>
        %49 = tpu.memref_squeeze %48 : memref<1x4xf32, #tpu.memory_space<vmem>> -> memref<4xf32, #tpu.memory_space<vmem>>
        %50 = tpu.memref_slice %arg11[%c0_i32_32, %45] : memref<2x8x!tpu.dma_semaphore, #tpu.memory_space<semaphore_mem>> -> memref<1x1x!tpu.dma_semaphore, #tpu.memory_space<semaphore_mem>>
        %51 = tpu.memref_squeeze %50 : memref<1x1x!tpu.dma_semaphore, #tpu.memory_space<semaphore_mem>> -> memref<!tpu.dma_semaphore, #tpu.memory_space<semaphore_mem>>
        tpu.wait_dma2 semaphore(%51 : memref<!tpu.dma_semaphore, #tpu.memory_space<semaphore_mem>>) src(%47 : memref<4xf32, #tpu.memory_space<vmem>>) dst(%49 : memref<4xf32, #tpu.memory_space<vmem>>)
        %c0_i32_35 = arith.constant 0 : i32
        %c1_i32_36 = arith.constant 1 : i32
        %c0_i32_37 = arith.constant 0 : i32
        %52 = tpu.memref_slice %arg4[%c0_i32_35, %c0_i32_37] : memref<48x4xf32, #tpu.memory_space<vmem>> -> memref<1x4xf32, #tpu.memory_space<vmem>>
        %53 = tpu.memref_squeeze %52 : memref<1x4xf32, #tpu.memory_space<vmem>> -> memref<4xf32, #tpu.memory_space<vmem>>
        %c0_i32_38 = arith.constant 0 : i32
        %54 = tpu.memref_slice %arg10[%44, %c0_i32_38] : memref<8x4xf32, #tpu.memory_space<vmem>> -> memref<1x4xf32, #tpu.memory_space<vmem>>
        %55 = tpu.memref_squeeze %54 : memref<1x4xf32, #tpu.memory_space<vmem>> -> memref<4xf32, #tpu.memory_space<vmem>>
        %56 = tpu.memref_slice %arg11[%c1_i32_36, %45] : memref<2x8x!tpu.dma_semaphore, #tpu.memory_space<semaphore_mem>> -> memref<1x1x!tpu.dma_semaphore, #tpu.memory_space<semaphore_mem>>
        %57 = tpu.memref_squeeze %56 : memref<1x1x!tpu.dma_semaphore, #tpu.memory_space<semaphore_mem>> -> memref<!tpu.dma_semaphore, #tpu.memory_space<semaphore_mem>>
        tpu.wait_dma2 semaphore(%57 : memref<!tpu.dma_semaphore, #tpu.memory_space<semaphore_mem>>) src(%53 : memref<4xf32, #tpu.memory_space<vmem>>) dst(%55 : memref<4xf32, #tpu.memory_space<vmem>>)
      } else {
      }
      %c7_i32 = arith.constant 7 : i32
      %31 = arith.andi %21, %c7_i32 : i32
      %c0_i32_23 = arith.constant 0 : i32
      %c0_i32_24 = arith.constant 0 : i32
      %32 = tpu.memref_slice %arg3[%24, %c0_i32_24] : memref<32x4xf32, #tpu.memory_space<vmem>> -> memref<1x4xf32, #tpu.memory_space<vmem>>
      %33 = tpu.memref_squeeze %32 : memref<1x4xf32, #tpu.memory_space<vmem>> -> memref<4xf32, #tpu.memory_space<vmem>>
      %c0_i32_25 = arith.constant 0 : i32
      %34 = tpu.memref_slice %arg9[%21, %c0_i32_25] : memref<8x4xf32, #tpu.memory_space<vmem>> -> memref<1x4xf32, #tpu.memory_space<vmem>>
      %35 = tpu.memref_squeeze %34 : memref<1x4xf32, #tpu.memory_space<vmem>> -> memref<4xf32, #tpu.memory_space<vmem>>
      %36 = tpu.memref_slice %arg11[%c0_i32_23, %31] : memref<2x8x!tpu.dma_semaphore, #tpu.memory_space<semaphore_mem>> -> memref<1x1x!tpu.dma_semaphore, #tpu.memory_space<semaphore_mem>>
      %37 = tpu.memref_squeeze %36 : memref<1x1x!tpu.dma_semaphore, #tpu.memory_space<semaphore_mem>> -> memref<!tpu.dma_semaphore, #tpu.memory_space<semaphore_mem>>
      tpu.enqueue_dma source(%33 : memref<4xf32, #tpu.memory_space<vmem>>) target(%35 : memref<4xf32, #tpu.memory_space<vmem>>) target_semaphore(%37 : memref<!tpu.dma_semaphore, #tpu.memory_space<semaphore_mem>>)
      %c1_i32_26 = arith.constant 1 : i32
      %c0_i32_27 = arith.constant 0 : i32
      %38 = tpu.memref_slice %arg4[%27, %c0_i32_27] : memref<48x4xf32, #tpu.memory_space<vmem>> -> memref<1x4xf32, #tpu.memory_space<vmem>>
      %39 = tpu.memref_squeeze %38 : memref<1x4xf32, #tpu.memory_space<vmem>> -> memref<4xf32, #tpu.memory_space<vmem>>
      %c0_i32_28 = arith.constant 0 : i32
      %40 = tpu.memref_slice %arg10[%21, %c0_i32_28] : memref<8x4xf32, #tpu.memory_space<vmem>> -> memref<1x4xf32, #tpu.memory_space<vmem>>
      %41 = tpu.memref_squeeze %40 : memref<1x4xf32, #tpu.memory_space<vmem>> -> memref<4xf32, #tpu.memory_space<vmem>>
      %42 = tpu.memref_slice %arg11[%c1_i32_26, %31] : memref<2x8x!tpu.dma_semaphore, #tpu.memory_space<semaphore_mem>> -> memref<1x1x!tpu.dma_semaphore, #tpu.memory_space<semaphore_mem>>
      %43 = tpu.memref_squeeze %42 : memref<1x1x!tpu.dma_semaphore, #tpu.memory_space<semaphore_mem>> -> memref<!tpu.dma_semaphore, #tpu.memory_space<semaphore_mem>>
      tpu.enqueue_dma source(%39 : memref<4xf32, #tpu.memory_space<vmem>>) target(%41 : memref<4xf32, #tpu.memory_space<vmem>>) target_semaphore(%43 : memref<!tpu.dma_semaphore, #tpu.memory_space<semaphore_mem>>)
    }
    %c8_i32_1 = arith.constant 8 : i32
    %c0_i32_2 = arith.constant 0 : i32
    %c8_i32_3 = arith.constant 8 : i32
    %2 = arith.addi %c0_i32_2, %c8_i32_3 : i32
    %c1_i32_4 = arith.constant 1 : i32
    scf.for %arg12 = %c0_i32_2 to %2 step %c1_i32_4  : i32 {
      %c1_i32_19 = arith.constant 1 : i32
      %20 = arith.muli %arg12, %c1_i32_19 : i32
      %c0_i32_20 = arith.constant 0 : i32
      %21 = arith.addi %c0_i32_20, %20 : i32
      %c7_i32 = arith.constant 7 : i32
      %22 = arith.andi %21, %c7_i32 : i32
      %c0_i32_21 = arith.constant 0 : i32
      %c0_i32_22 = arith.constant 0 : i32
      %c0_i32_23 = arith.constant 0 : i32
      %23 = tpu.memref_slice %arg3[%c0_i32_21, %c0_i32_23] : memref<32x4xf32, #tpu.memory_space<vmem>> -> memref<1x4xf32, #tpu.memory_space<vmem>>
      %24 = tpu.memref_squeeze %23 : memref<1x4xf32, #tpu.memory_space<vmem>> -> memref<4xf32, #tpu.memory_space<vmem>>
      %c0_i32_24 = arith.constant 0 : i32
      %25 = tpu.memref_slice %arg9[%21, %c0_i32_24] : memref<8x4xf32, #tpu.memory_space<vmem>> -> memref<1x4xf32, #tpu.memory_space<vmem>>
      %26 = tpu.memref_squeeze %25 : memref<1x4xf32, #tpu.memory_space<vmem>> -> memref<4xf32, #tpu.memory_space<vmem>>
      %27 = tpu.memref_slice %arg11[%c0_i32_22, %22] : memref<2x8x!tpu.dma_semaphore, #tpu.memory_space<semaphore_mem>> -> memref<1x1x!tpu.dma_semaphore, #tpu.memory_space<semaphore_mem>>
      %28 = tpu.memref_squeeze %27 : memref<1x1x!tpu.dma_semaphore, #tpu.memory_space<semaphore_mem>> -> memref<!tpu.dma_semaphore, #tpu.memory_space<semaphore_mem>>
      tpu.wait_dma2 semaphore(%28 : memref<!tpu.dma_semaphore, #tpu.memory_space<semaphore_mem>>) src(%24 : memref<4xf32, #tpu.memory_space<vmem>>) dst(%26 : memref<4xf32, #tpu.memory_space<vmem>>)
      %c0_i32_25 = arith.constant 0 : i32
      %c1_i32_26 = arith.constant 1 : i32
      %c0_i32_27 = arith.constant 0 : i32
      %29 = tpu.memref_slice %arg4[%c0_i32_25, %c0_i32_27] : memref<48x4xf32, #tpu.memory_space<vmem>> -> memref<1x4xf32, #tpu.memory_space<vmem>>
      %30 = tpu.memref_squeeze %29 : memref<1x4xf32, #tpu.memory_space<vmem>> -> memref<4xf32, #tpu.memory_space<vmem>>
      %c0_i32_28 = arith.constant 0 : i32
      %31 = tpu.memref_slice %arg10[%21, %c0_i32_28] : memref<8x4xf32, #tpu.memory_space<vmem>> -> memref<1x4xf32, #tpu.memory_space<vmem>>
      %32 = tpu.memref_squeeze %31 : memref<1x4xf32, #tpu.memory_space<vmem>> -> memref<4xf32, #tpu.memory_space<vmem>>
      %33 = tpu.memref_slice %arg11[%c1_i32_26, %22] : memref<2x8x!tpu.dma_semaphore, #tpu.memory_space<semaphore_mem>> -> memref<1x1x!tpu.dma_semaphore, #tpu.memory_space<semaphore_mem>>
      %34 = tpu.memref_squeeze %33 : memref<1x1x!tpu.dma_semaphore, #tpu.memory_space<semaphore_mem>> -> memref<!tpu.dma_semaphore, #tpu.memory_space<semaphore_mem>>
      tpu.wait_dma2 semaphore(%34 : memref<!tpu.dma_semaphore, #tpu.memory_space<semaphore_mem>>) src(%30 : memref<4xf32, #tpu.memory_space<vmem>>) dst(%32 : memref<4xf32, #tpu.memory_space<vmem>>)
    }
    %c8_i32_5 = arith.constant 8 : i32
    %c0 = arith.constant 0 : index
    %c0_6 = arith.constant 0 : index
    %3 = vector.load %arg9[%c0, %c0_6] : memref<8x4xf32, #tpu.memory_space<vmem>>, vector<8x4xf32>
    %c0_7 = arith.constant 0 : index
    %c0_8 = arith.constant 0 : index
    %4 = vector.load %arg10[%c0_7, %c0_8] : memref<8x4xf32, #tpu.memory_space<vmem>>, vector<8x4xf32>
    %c0_9 = arith.constant 0 : index
    %c0_10 = arith.constant 0 : index
    %5 = vector.load %arg5[%c0_9, %c0_10] : memref<1x4xf32, #tpu.memory_space<vmem>>, vector<1x4xf32>
    %cst = arith.constant dense<0.000000e+00> : vector<1x8xf32>
    %6 = tpu.matmul %5, %3, %cst {dimension_numbers = #tpu.dot_dimension_numbers<[1], [1], [0], [0], [0, 0, 1, 0], [], []>} : vector<1x4xf32>, vector<8x4xf32>, vector<1x8xf32> -> vector<1x8xf32>
    %c0_11 = arith.constant 0 : index
    %c0_12 = arith.constant 0 : index
    %7 = vector.load %arg6[%c0_11, %c0_12] : memref<1x4xf32, #tpu.memory_space<vmem>>, vector<1x4xf32>
    %cst_13 = arith.constant dense<0.000000e+00> : vector<1x8xf32>
    %8 = tpu.matmul %7, %4, %cst_13 {dimension_numbers = #tpu.dot_dimension_numbers<[1], [1], [0], [0], [0, 0, 1, 0], [], []>} : vector<1x4xf32>, vector<8x4xf32>, vector<1x8xf32> -> vector<1x8xf32>
    %9 = arith.addf %6, %8 : vector<1x8xf32>
    %c0_14 = arith.constant 0 : index
    %10 = memref.load %arg7[%c0_14] : memref<1xf32, #tpu.memory_space<smem>>
    %11 = vector.broadcast %10 : f32 to vector<1x8xf32>
    %12 = arith.addf %9, %11 : vector<1x8xf32>
    %13 = arith.negf %12 : vector<1x8xf32>
    %14 = math.exp %13 : vector<1x8xf32>
    %cst_15 = arith.constant 1.000000e+00 : f32
    %15 = vector.broadcast %cst_15 : f32 to vector<1x8xf32>
    %16 = arith.addf %15, %14 : vector<1x8xf32>
    %17 = arith.divf %15, %16 : vector<1x8xf32>
    %18 = vector.shape_cast %17 : vector<1x8xf32> to vector<1x1x8xf32>
    %c0_16 = arith.constant 0 : index
    %c0_17 = arith.constant 0 : index
    %c0_18 = arith.constant 0 : index
    %19 = vector.load %arg8[%c0_16, %c0_17, %c0_18] : memref<1x1x8xf32, #tpu.memory_space<vmem>>, vector<1x1x8xf32>
    tpu.vector_store %arg8[%c0_16, %c0_17, %c0_18], %18 {strides = array<i32>} : memref<1x1x8xf32, #tpu.memory_space<vmem>>, vector<1x1x8xf32>,
    return
  }
  func.func @transform_0(%arg0: i32, %arg1: memref<8xi32, #tpu.memory_space<smem>>, %arg2: memref<8xi32, #tpu.memory_space<smem>>) -> (i32, i32) {
    %c0_i32 = arith.constant 0 : i32
    %c0_i32_0 = arith.constant 0 : i32
    %c0_i32_1 = arith.constant 0 : i32
    return %c0_i32, %c0_i32_0 : i32, i32
  }
  func.func @transform_1(%arg0: i32, %arg1: memref<8xi32, #tpu.memory_space<smem>>, %arg2: memref<8xi32, #tpu.memory_space<smem>>) -> (i32, i32) {
    %c0_i32 = arith.constant 0 : i32
    %c0_i32_0 = arith.constant 0 : i32
    %c0_i32_1 = arith.constant 0 : i32
    return %c0_i32, %c0_i32_0 : i32, i32
  }
  func.func @transform_2(%arg0: i32, %arg1: memref<8xi32, #tpu.memory_space<smem>>, %arg2: memref<8xi32, #tpu.memory_space<smem>>) -> (i32, i32) {
    %c0_i32 = arith.constant 0 : i32
    %c0_i32_0 = arith.constant 0 : i32
    %c0_i32_1 = arith.constant 0 : i32
    return %c0_i32, %c0_i32_0 : i32, i32
  }
  func.func @transform_3(%arg0: i32, %arg1: memref<8xi32, #tpu.memory_space<smem>>, %arg2: memref<8xi32, #tpu.memory_space<smem>>) -> (i32, i32) {
    %c0_i32 = arith.constant 0 : i32
    %c0_i32_0 = arith.constant 0 : i32
    %c0_i32_1 = arith.constant 0 : i32
    return %c0_i32, %c0_i32_0 : i32, i32
  }
  func.func @transform_4(%arg0: i32, %arg1: memref<8xi32, #tpu.memory_space<smem>>, %arg2: memref<8xi32, #tpu.memory_space<smem>>) -> i32 {
    %c0_i32 = arith.constant 0 : i32
    %c0_i32_0 = arith.constant 0 : i32
    return %c0_i32 : i32
  }
  func.func @transform_5(%arg0: i32, %arg1: memref<8xi32, #tpu.memory_space<smem>>, %arg2: memref<8xi32, #tpu.memory_space<smem>>) -> (i32, i32, i32) {
    %c0_i32 = arith.constant 0 : i32
    %c0_i32_0 = arith.constant 0 : i32
    %c0_i32_1 = arith.constant 0 : i32
    return %arg0, %c0_i32, %c0_i32_0 : i32, i32, i32
  }
}

</mosaic_0001>

<bundles_post_ra>
// kernel: tpu_custom_call.1
= control target key start
LH: loop header
LB: loop body
LE: loop exit
PB: predicated region body
PF: predicated region fallthrough
CT: control target
= control target key end

     0   :  { %s519_s30 = smov [#allocation6]   ;;  %s520_s8 = smov [#allocation7]   ;;  %s591_s0 = inlined_call_operand.vmem [shape: s32[8], index: 0, kind: input, shape index: {}]   ;;  %s592_s2 = inlined_call_operand.vmem [shape: f32[32,4], index: 2, kind: input, shape index: {}]   ;;  %s593_s3 = inlined_call_operand.vmem [shape: f32[48,4], index: 3, kind: input, shape index: {}]   ;;  %s594_s4 = inlined_call_operand.vmem [shape: f32[1,4], index: 4, kind: input, shape index: {}]   ;;  %s595_s5 = inlined_call_operand.vmem [shape: f32[1,4], index: 5, kind: input, shape index: {}]   ;;  %s596_s7 = inlined_call_operand.hbm [shape: f32[1,1,8], index: 7, kind: output, shape index: {}]   ;;  %s597_s1 = inlined_call_operand.vmem [shape: s32[8], index: 1, kind: input, shape index: {}]   ;;  %s598_s6 = inlined_call_operand.<no memory space> [shape: f32[1], index: 6, kind: input, shape index: {}]  }
   0x1   :  { %s13_s26 = sshll.u32 %s591_s0, 4  ;;  %s18_s29 = sshll.u32 %s597_s1, 4  ;;  %s14_s26 = int_to_ptr.vmem [resolvable:$true] %s13_s26  ;;  %s19_s29 = int_to_ptr.vmem [resolvable:$true] %s18_s29 }
   0x2   :  { %16 = dma.vmem_to_smem %s14_s26, 16, %s519_s30, [#allocation5] }
   0x3   :  { %21 = dma.vmem_to_smem %s19_s29, 16, %s520_s8, [#allocation5] }
   0x4   :  { %22 = sst [smem:[#allocation8]] %s598_s6 }
   0x5   :  { %495 = dma.done.wait [#allocation5], 32 }
   0x6   :  { %496 = vsyncadd [#allocation5], 4294967264 }
   0x7   :  { %25 = sfence }
   0x8   :  { %26 = vsyncpa [#allocation10], 0  ;;  %s571_s11 = smov 0  }
   0x9 LB: > { %s45_s0 = sld [smem:[#allocation6 + %s513_s11]]  ;;  %p415_p0 = scmp.ge.s32.totalorder %s513_s11, 8  ;;  %s513_s11 = sphi %s571_s11, %s43_s11  }
   0xa   : > { %s46_s1 = sld [smem:[#allocation7 + %s513_s11]]  ;;  %s390_s12 = sadd.s32 4294967288, %s513_s11 }
   0xb   : > { %s52_s13 = sand.u32 7, %s390_s12 }
   0xc   : > { %s53_s14 = scalar_lea.sflag [#allocation4], %s52_s13 }
   0xd   : > { %498 = dma.done.wait (%p415_p0), %s53_s14, 16 }
   0xe   : > { %500 = vsyncadd (%p415_p0), %s53_s14, 4294967280  ;;  %s360_s15 = scalar_lea.sflag %s53_s14, 8 [#allocation4] }
   0xf   : > { %502 = dma.done.wait (%p415_p0), %s360_s15, 16 }
  0x10   : > { %504 = vsyncadd (%p415_p0), %s360_s15, 4294967280  ;;  %s60_s6 = sand.u32 7, %s513_s11  ;;  %s61_s18 = scalar_lea.vmem %s592_s2, %s45_s0 }
  0x11   : > { %v78_v0 = vld [vmem:[%s61_s18] sm:$0x1]  ;;  %s62_s19 = scalar_lea.vmem [#allocation2], %s513_s11  ;;  %s63_s20 = scalar_lea.sflag [#allocation4], %s60_s6 }
  0x12   : > { %79 = vst [vmem:[%s62_s19] sm:$0x1] %v78_v0 }
  0x13   : > { %97 = vsyncadd %s63_s20, 16  ;;  %s98_s23 = scalar_lea.vmem %s593_s3, %s46_s1  ;;  %s367_s24 = scalar_lea.sflag %s63_s20, 8 [#allocation4] }
  0x14   : > { %v116_v1 = vld [vmem:[%s98_s23] sm:$0x1]  ;;  %s99_s25 = scalar_lea.vmem [#allocation3], %s513_s11 }
  0x15   : > { %117 = vst [vmem:[%s99_s25] sm:$0x1] %v116_v1 }
  0x16   : > { %135 = vsyncadd %s367_s24, 16  ;;  %s43_s11 = sadd.s32 1, %s513_s11  }
  0x17   : > { %p40_p1 = scmp.ge.s32.totalorder %s43_s11, 8  }
  0x18   :  { %s515_s26 = smov (%p40_p1), 0  }
  0x19   :  { %42 = sbr.rel (!%p40_p1) target bundleno = 9 (0x9), region = 151 }
  0x1e LB: > { %s142_s27 = sand.u32 7, %s517_s26  ;;  %s517_s26 = sphi %s515_s26, %s141_s26  }
  0x1f   : > { %s143_s28 = scalar_lea.sflag [#allocation4], %s142_s27 }
  0x20   : > { %505 = dma.done.wait %s143_s28, 16 }
  0x21   : > { %506 = vsyncadd %s143_s28, 4294967280  ;;  %s370_s29 = scalar_lea.sflag %s143_s28, 8 [#allocation4] }
  0x22   : > { %507 = dma.done.wait %s370_s29, 16 }
  0x23   : > { %508 = vsyncadd %s370_s29, 4294967280  ;;  %s141_s26 = sadd.s32 1, %s517_s26  }
  0x24   : > { %p138_p2 = scmp.ge.s32.totalorder %s141_s26, 8  }
  0x25   :  { %v151_v2 = vld [vmem:[#allocation3] sm:$0xff] (%p138_p2)  ;;  %vm154_vm0 = vcmask (%p138_p2), 31744   ;;  %v150_v3 = vld [vmem:[#allocation2] sm:$0xff] (%p138_p2)  ;;  %s207_s9 = sld [smem:[#allocation8]] (%p138_p2)  ;;  %s238_s0 = sshll.u32 (%p138_p2), %s596_s7, 4  ;;  %vm229_vm4 = vcmask (%p138_p2), 57344   ;;  %s239_s0 = int_to_ptr.hbm [resolvable:$true] %s238_s0 }
  0x26   :  { %140 = sbr.rel (!%p138_p2) target bundleno = 30 (0x1e), region = 162  ;;  %391 = vmatpush.xpose.msk.msra.mxu0 (%p138_p2), %vm154_vm0, %v151_v2  ;;  %393 = vmatpush.xpose.msk.msra.mxu1 (%p138_p2), %vm154_vm0, %v150_v3  ;;  %v153_v4 = vld [vmem:[%s595_s5] sm:$0x1] (%p138_p2) }
  0x27   :  { %v152_v5 = vld [vmem:[%s594_s4] sm:$0x1] (%p138_p2)  ;;  %s521_s4 = smov (%p138_p2), [#allocation9]  }
  0x28   :  { %s236_s5 = sshll.u32 (%p138_p2), %s521_s4, 4  ;;  %s237_s5 = int_to_ptr.vmem [resolvable:$true] %s236_s5 }
  0x29   :  { %392 = vmatmul.msk.f32.vlgmr.msra.gmra.mxu0 (%p138_p2), %vm154_vm0, %v153_v4  ;;  %394 = vmatmul.msk.f32.vlgmr.msra.gmra.mxu1 (%p138_p2), %vm154_vm0, %v152_v5 }
  0x2b   :  { %v208_v8 = vstv %s207_s9 }
  0xa6   :  { %v178_v6 = vpop.f32.mrf.mxu0  ;;  %v204_v7 = vpop.f32.mrf.mxu1 }
  0xa7   :  { %v205_v9 = vadd.f32 %v204_v7, %v178_v6 }
  0xa9   :  { %v209_v10 = vadd.f32 %v208_v8, %v205_v9 }
  0xab   :  { %v395_v11 = vmul.f32 -1.442695, %v209_v10 }
  0xad   :  { %435 = vpow2.f32 %v395_v11 }
  0xb3   :  { %v436_v12 = vpop.eup %435 }
  0xb4   :  { %v213_v13 = vadd.f32 1.0, %v436_v12 }
  0xb6   :  { %437 = vrcp.f32 %v213_v13  ;;  %v225_v17 = vand.u32 2147483648, %v213_v13  ;;  %v223_v19 = vand.u32 2147483647, %v213_v13  ;;  %vm219_vm2 = vweird.f32 %v213_v13 }
  0xb8   :  { %v226_v21 = vor.u32 1.1754944e-38, %v225_v17  ;;  %vm224_vm5 = vcmp.eq.f32.partialorder %v223_v19, 8.507059e+37 }
  0xbc   :  { %v438_v14 = vpop.eup %437 }
  0xbd   :  { %v215_v15 = vmul.f32 %v438_v14, %v213_v13  ;;  %vm220_vm1 = vweird.f32 %v438_v14 }
  0xbe   :  { %vm221_vm3 = vmor %vm219_vm2, %vm220_vm1 }
  0xbf   :  { %v216_v16 = vsub.f32 1.0, %v215_v15 }
  0xc1   :  { %v217_v18 = vmul.f32 %v438_v14, %v216_v16 }
  0xc3   :  { %v218_v20 = vadd.f32 %v438_v14, %v217_v18 }
  0xc5   :  { %v222_v22 = vsel %vm221_vm3, %v438_v14, %v218_v20 }
  0xc6   :  { %v227_v23 = vsel %vm224_vm5, %v226_v21, %v222_v22 }
  0xc7   :  { %230 = vst.msk [vmem:[#allocation9] sm:$0x1] %vm229_vm4, %v227_v23 }
  0xc8   :  { %241 = dma.vmem_to_hbm [thread:$0]  %s237_s5, 16, %s239_s0, [#allocation10]  }
  0xc9   :  { %509 = dma.done.wait [#allocation10], 16  }
  0xca   :  { %510 = vsyncadd [#allocation10], 4294967280 }
  0xcb   :  { %246 = vsyncpa [#allocation10], 1 }
  0xcc   :  { %247 = vsyncmov [#allocation4] }
  0xcf   :  { %s248_s1 = vpop.sfrf %247 }
  0xd0   :  { %p396_p3 = scmp.ne.s32.totalorder %s248_s1, 0 }
  0xd2   :  { %252 = shalt.err (%p396_p3)  }
  0xd3   :  { %254 = vsyncmov [#allocation4 + $0x1] }
  0xd6   :  { %s255_s7 = vpop.sfrf %254 }
  0xd7   :  { %p397_p4 = scmp.ne.s32.totalorder %s255_s7, 0 }
  0xd9   :  { %259 = shalt.err (%p397_p4)  }
  0xda   :  { %261 = vsyncmov [#allocation4 + $0x2] }
  0xdd   :  { %s262_s12 = vpop.sfrf %261 }
  0xde   :  { %p398_p5 = scmp.ne.s32.totalorder %s262_s12, 0 }
  0xe0   :  { %266 = shalt.err (%p398_p5)  }
  0xe1   :  { %268 = vsyncmov [#allocation4 + $0x3] }
  0xe4   :  { %s269_s13 = vpop.sfrf %268 }
  0xe5   :  { %p399_p6 = scmp.ne.s32.totalorder %s269_s13, 0 }
  0xe7   :  { %273 = shalt.err (%p399_p6)  }
  0xe8   :  { %275 = vsyncmov [#allocation4 + $0x4] }
  0xeb   :  { %s276_s14 = vpop.sfrf %275 }
  0xec   :  { %p400_p7 = scmp.ne.s32.totalorder %s276_s14, 0 }
  0xee   :  { %280 = shalt.err (%p400_p7)  }
  0xef   :  { %282 = vsyncmov [#allocation4 + $0x5] }
  0xf2   :  { %s283_s15 = vpop.sfrf %282 }
  0xf3   :  { %p401_p8 = scmp.ne.s32.totalorder %s283_s15, 0 }
  0xf5   :  { %287 = shalt.err (%p401_p8)  }
  0xf6   :  { %289 = vsyncmov [#allocation4 + $0x6] }
  0xf9   :  { %s290_s6 = vpop.sfrf %289 }
  0xfa   :  { %p402_p9 = scmp.ne.s32.totalorder %s290_s6, 0 }
  0xfc   :  { %294 = shalt.err (%p402_p9)  }
  0xfd   :  { %296 = vsyncmov [#allocation4 + $0x7] }
 0x100   :  { %s297_s16 = vpop.sfrf %296 }
 0x101   :  { %p403_p10 = scmp.ne.s32.totalorder %s297_s16, 0 }
 0x103   :  { %301 = shalt.err (%p403_p10)  }
 0x104   :  { %303 = vsyncmov [#allocation4 + $0x8] }
 0x107   :  { %s304_s17 = vpop.sfrf %303 }
 0x108   :  { %p404_p11 = scmp.ne.s32.totalorder %s304_s17, 0 }
 0x10a   :  { %308 = shalt.err (%p404_p11)  }
 0x10b   :  { %310 = vsyncmov [#allocation4 + $0x9] }
 0x10e   :  { %s311_s18 = vpop.sfrf %310 }
 0x10f   :  { %p405_p12 = scmp.ne.s32.totalorder %s311_s18, 0 }
 0x111   :  { %315 = shalt.err (%p405_p12)  }
 0x112   :  { %317 = vsyncmov [#allocation4 + $0xa] }
 0x115   :  { %s318_s19 = vpop.sfrf %317 }
 0x116   :  { %p406_p13 = scmp.ne.s32.totalorder %s318_s19, 0 }
 0x118   :  { %322 = shalt.err (%p406_p13)  }
 0x119   :  { %324 = vsyncmov [#allocation4 + $0xb] }
 0x11c   :  { %s325_s20 = vpop.sfrf %324 }
 0x11d   :  { %p407_p0 = scmp.ne.s32.totalorder %s325_s20, 0 }
 0x11f   :  { %329 = shalt.err (%p407_p0)  }
 0x120   :  { %331 = vsyncmov [#allocation4 + $0xc] }
 0x123   :  { %s332_s21 = vpop.sfrf %331 }
 0x124   :  { %p408_p1 = scmp.ne.s32.totalorder %s332_s21, 0 }
 0x126   :  { %336 = shalt.err (%p408_p1)  }
 0x127   :  { %338 = vsyncmov [#allocation4 + $0xd] }
 0x12a   :  { %s339_s22 = vpop.sfrf %338 }
 0x12b   :  { %p409_p2 = scmp.ne.s32.totalorder %s339_s22, 0 }
 0x12d   :  { %343 = shalt.err (%p409_p2)  }
 0x12e   :  { %345 = vsyncmov [#allocation4 + $0xe] }
 0x131   :  { %s346_s23 = vpop.sfrf %345 }
 0x132   :  { %p410_p3 = scmp.ne.s32.totalorder %s346_s23, 0 }
 0x134   :  { %350 = shalt.err (%p410_p3)  }
 0x135   :  { %352 = vsyncmov [#allocation4 + $0xf] }
 0x138   :  { %s353_s24 = vpop.sfrf %352 }
 0x139   :  { %p411_p4 = scmp.ne.s32.totalorder %s353_s24, 0 }
 0x13b   :  { %357 = shalt.err (%p411_p4)  }

</bundles_post_ra>
